<compile_context>
chip_gen: v5e
topology: v5e:2x2
jax: 0.10.0
libtpu: 0.0.40
codegen_flags: <defaults>
</compile_context>

<pallas_src>
import jax
import jax.numpy as jnp
from jax.experimental import pallas as pl
from jax.experimental.pallas import tpu as pltpu


def _vmem_budget_bytes():
    """Usable VMEM budget: ~48 MiB on v7x (64 MiB physical), ~96 MiB on v5e/v6e (128 MiB)."""
    phys = 128 * 1024 * 1024
    try:
        kind = jax.devices()[0].device_kind.lower()
        if "v7" in kind:
            phys = 64 * 1024 * 1024
    except Exception:
        pass
    try:
        cap = int(getattr(pltpu.get_tpu_info(), "vmem_capacity_bytes", 0) or 0)
        if cap > 0:
            phys = cap
    except Exception:
        pass
    return int(min((phys * 3) // 4, 96 * 1024 * 1024))


def _divisors(n):
    ds = set()
    i = 1
    while i * i <= n:
        if n % i == 0:
            ds.add(i)
            ds.add(n // i)
        i += 1
    return sorted(ds)


def _spatial_tile(hw, c, f, budget_bytes):
    """Largest spatial tile T (dividing HW) whose working set fits the VMEM budget.

    Working set per grid step: double-buffered f32 activation block (2*C*T*4 B)
    plus the (F, T) f32 conv intermediate, plus ~2 MiB slack for resident
    weights / accumulators.  Single block (KT = 1) whenever C*HW fits.
    """
    per_elem = 2 * c * 4 + f * 4
    fixed = 2 * 1024 * 1024
    max_t = max(128, (budget_bytes - fixed) // per_elem)
    if hw <= max_t:
        return hw                      # one block: no reduction steps at all
    divs = [d for d in _divisors(hw) if d <= max_t]
    aligned = [d for d in divs if d % 128 == 0]
    if aligned:
        return max(aligned)            # lane-aligned (128-multiple) tile
    # TODO(synk): HW with no 128-aligned divisor that fits -> largest fitting divisor.
    return max(divs) if divs else hw


def _make_backbone_pool_kernel(kt):
    """1x1-conv backbone + ReLU + spatial-sum pooling over kt spatial tiles."""

    def kernel(x_ref, wbb_ref, bbb_ref, pool_ref, acc_ref):
        # In-kernel bf16 cast of the activation tile (VPU work hidden under the
        # DMA); the f32 stream is read from HBM exactly once, no extra convert.
        x_bf = x_ref[0].astype(jnp.bfloat16)                              # (C, T)
        conv = jnp.dot(wbb_ref[...], x_bf,
                       preferred_element_type=jnp.float32)                # (F, T) f32
        conv = jnp.maximum(conv + bbb_ref[...], 0.0)                      # bias + ReLU
        psum = jnp.sum(conv, axis=-1, keepdims=True)                      # (F, 1) partial pool sum

        if kt == 1:
            # Single spatial block: no accumulator / pl.when gating needed.
            pool_ref[...] = psum[None, None]
        else:
            k = pl.program_id(2)

            @pl.when(k == 0)
            def _():
                acc_ref[...] = jnp.zeros_like(acc_ref)

            acc_ref[...] += psum

            @pl.when(k == kt - 1)
            def _():
                pool_ref[...] = acc_ref[...][None, None]

    return kernel


def facial_keypoints_detector(x_nchw, params):
    """Forward pass.  x_nchw: (B, C, H, W) float32 (or (C, H, W))."""
    if x_nchw.ndim == 3:                      # mirror the unsqueeze(0) branch
        x_nchw = x_nchw[None]
    wbb, bbb, w1t, b1c, w2t, b2c = params     # PyTorch-style (out, in) weights
    B, C, H, W = x_nchw.shape
    HW = H * W
    F = wbb.shape[0]
    NC = w1t.shape[0]

    budget = _vmem_budget_bytes()
    T = _spatial_tile(HW, C, F, budget)
    kt_total = max(1, HW // T)

    # Small-batch (e.g. the unsqueeze branch, B == 1): split the spatial
    # reduction over a second "parallel" axis so both v7x TensorCores have
    # work; partial sums are combined in the tiny XLA epilogue below.
    S = 2 if (B == 1 and kt_total >= 2 and kt_total % 2 == 0) else 1
    KT = kt_total // S

    # Free reshape, NO dtype convert in the wrapper: the f32 activation stream
    # is DMA'd once and cast to bf16 per tile inside the kernel.
    x3d = x_nchw.reshape(B, C, HW)
    wbb_bf = wbb.astype(jnp.bfloat16)         # tiny resident weight -> bf16 MXU path

    act_kwargs = {}
    if KT >= 8 and T <= 512:
        # Many small per-step DMAs: deepen buffering to hide DMA issue latency.
        act_kwargs["pipeline_mode"] = pl.Buffered(3)
    act_spec = pl.BlockSpec((1, C, T), lambda b, s, k: (b, 0, s * KT + k),
                            **act_kwargs)

    flops = 2 * B * HW * C * F
    bytes_accessed = 4 * x3d.size + 2 * wbb_bf.size + 4 * bbb.size + 4 * B * S * F

    pooled = pl.pallas_call(
        _make_backbone_pool_kernel(KT),
        out_shape=jax.ShapeDtypeStruct((B, S, F, 1), jnp.float32),
        grid_spec=pltpu.PrefetchScalarGridSpec(
            num_scalar_prefetch=0,
            grid=(B, S, KT),                            # reduction axis last
            in_specs=[
                act_spec,                                            # activation stream (f32)
                pl.BlockSpec((F, C), lambda b, s, k: (0, 0)),        # conv1x1 weight (bf16)
                pl.BlockSpec((F, 1), lambda b, s, k: (0, 0)),        # conv bias (f32)
            ],
            out_specs=pl.BlockSpec((1, 1, F, 1), lambda b, s, k: (b, s, 0, 0)),
            scratch_shapes=[pltpu.VMEM((F, 1), jnp.float32)],        # pool accumulator
        ),
        compiler_params=pltpu.CompilerParams(
            dimension_semantics=("parallel", "parallel", "arbitrary"),
            vmem_limit_bytes=budget,
        ),
        cost_estimate=pl.CostEstimate(
            flops=flops, transcendentals=0, bytes_accessed=bytes_accessed),
    )(x3d, wbb_bf, bbb)

    # --- DoubleStageRegressor head hoisted to XLA (review alternative): it is
    # O(B*F*NC) flops, f32-exact, and runs as lane-dense batched matmuls
    # instead of B serialized N=1 matvecs + masked stores inside the kernel.
    feat = pooled.sum(axis=1)[:, :, 0] * (1.0 / HW)        # AdaptiveAvgPool2d(1) -> (B, F)
    pre = feat @ w1t.T + b1c.reshape(1, -1)                # fc1
    s1 = jax.nn.sigmoid(pre)                               # s1 = sigmoid(fc1(x))
    s2 = pre @ w2t.T + b2c.reshape(1, -1)                  # s2 = fc2(fc1(x))
    return s1, s2


def ref_forward(x_nchw, params):
    """Pure-JAX (f32) reference mirroring the PyTorch semantics."""
    wbb, bbb, w1t, b1c, w2t, b2c = params
    conv = jnp.einsum('bchw,fc->bfhw', x_nchw, wbb) + bbb.reshape(1, -1, 1, 1)
    conv = jnp.maximum(conv, 0.0)
    feat = conv.mean(axis=(2, 3))                          # (B, F)
    pre = feat @ w1t.T + b1c.reshape(1, -1)
    return jax.nn.sigmoid(pre), pre @ w2t.T + b2c.reshape(1, -1)


def init_params(key, c_in, out_features, num_classes):
    ks = jax.random.split(key, 6)
    s = 0.1
    wbb = s * jax.random.normal(ks[0], (out_features, c_in), jnp.float32)        # conv1x1 W (F, Cin)
    bbb = s * jax.random.normal(ks[1], (out_features, 1), jnp.float32)
    w1 = s * jax.random.normal(ks[2], (num_classes, out_features), jnp.float32)  # fc1.weight
    b1 = s * jax.random.normal(ks[3], (num_classes, 1), jnp.float32)
    w2 = s * jax.random.normal(ks[4], (num_classes, num_classes), jnp.float32)   # fc2.weight
    b2 = s * jax.random.normal(ks[5], (num_classes, 1), jnp.float32)
    return wbb, bbb, w1, b1, w2, b2


if __name__ == "__main__":
    key = jax.random.PRNGKey(0)
    k_x, k_p = jax.random.split(key)

    B, C, H, W = 2, 4, 16, 16      # small NCHW input, as in PyTorch
    out_features = 32              # synthetic backbone.out_features
    num_classes = 30               # module default

    x = jax.random.normal(k_x, (B, C, H, W), jnp.float32)
    params = init_params(k_p, C, out_features, num_classes)

    s1, s2 = jax.jit(facial_keypoints_detector)(x, params)
    s1 = jax.block_until_ready(s1)
    s2 = jax.block_until_ready(s2)

    r1, r2 = ref_forward(x, params)
    assert s1.shape == (B, num_classes) and s2.shape == (B, num_classes)
    # bf16 conv inside the kernel -> relaxed tolerance vs the f32 reference
    assert jnp.allclose(s1, r1, rtol=5e-2, atol=5e-3), float(jnp.max(jnp.abs(s1 - r1)))
    assert jnp.allclose(s2, r2, rtol=5e-2, atol=5e-3), float(jnp.max(jnp.abs(s2 - r2)))

    print("KERNEL_OK")
</pallas_src>

<mosaic_0001>
module attributes {stable_mosaic.version = 11 : i64} {
  func.func @kernel(%arg0: i32, %arg1: i32, %arg2: i32, %arg3: memref<1x4x256xf32, #tpu.memory_space<vmem>>, %arg4: memref<32x4xbf16, #tpu.memory_space<vmem>>, %arg5: memref<32x1xf32, #tpu.memory_space<vmem>>, %arg6: memref<1x1x32x1xf32, #tpu.memory_space<vmem>>, %arg7: memref<32x1xf32, #tpu.memory_space<vmem>>) attributes {dimension_semantics = [#tpu.dimension_semantics<parallel>, #tpu.dimension_semantics<parallel>, #tpu.dimension_semantics<arbitrary>], iteration_bounds = array<i64: 2, 1, 1>, scalar_prefetch = 0 : i64, scratch_operands = 1 : i64, tpu.core_type = #tpu.core_type<tc>, window_params = [{transform_indices = @transform_0, window_bounds = array<i64: 1, 4, 256>}, {pipeline_mode = #tpu.pipeline_mode<synchronous>, transform_indices = @transform_1, window_bounds = array<i64: 32, 4>}, {pipeline_mode = #tpu.pipeline_mode<synchronous>, transform_indices = @transform_2, window_bounds = array<i64: 32, 1>}, {transform_indices = @transform_3, window_bounds = array<i64: 1, 1, 32, 1>}]} {
    %c0 = arith.constant 0 : index
    %c0_0 = arith.constant 0 : index
    %c0_1 = arith.constant 0 : index
    %0 = vector.load %arg3[%c0, %c0_0, %c0_1] : memref<1x4x256xf32, #tpu.memory_space<vmem>>, vector<1x4x256xf32>
    %1 = vector.shape_cast %0 : vector<1x4x256xf32> to vector<4x256xf32>
    %2 = arith.truncf %1 : vector<4x256xf32> to vector<4x256xbf16>
    %c0_2 = arith.constant 0 : index
    %c0_3 = arith.constant 0 : index
    %3 = vector.load %arg4[%c0_2, %c0_3] : memref<32x4xbf16, #tpu.memory_space<vmem>>, vector<32x4xbf16>
    %cst = arith.constant dense<0.000000e+00> : vector<32x256xf32>
    %4 = tpu.matmul %3, %2, %cst {dimension_numbers = #tpu.dot_dimension_numbers<[1], [0], [0], [1], [0, 0, 1, 1], [], []>} : vector<32x4xbf16>, vector<4x256xbf16>, vector<32x256xf32> -> vector<32x256xf32>
    %c0_4 = arith.constant 0 : index
    %c0_5 = arith.constant 0 : index
    %5 = vector.load %arg5[%c0_4, %c0_5] : memref<32x1xf32, #tpu.memory_space<vmem>>, vector<32x1xf32>
    %6 = vector.broadcast %5 : vector<32x1xf32> to vector<32x256xf32>
    %7 = arith.addf %4, %6 : vector<32x256xf32>
    %cst_6 = arith.constant 0.000000e+00 : f32
    %8 = vector.broadcast %cst_6 : f32 to vector<32x256xf32>
    %9 = arith.maximumf %7, %8 : vector<32x256xf32>
    %cst_7 = arith.constant dense<0.000000e+00> : vector<32xf32>
    %10 = vector.multi_reduction <add>, %9, %cst_7 [1] : vector<32x256xf32> to vector<32xf32>
    %11 = vector.shape_cast %10 : vector<32xf32> to vector<32x1xf32>
    %12 = vector.shape_cast %11 : vector<32x1xf32> to vector<1x1x32x1xf32>
    %c0_8 = arith.constant 0 : index
    %c0_9 = arith.constant 0 : index
    %c0_10 = arith.constant 0 : index
    %c0_11 = arith.constant 0 : index
    %13 = vector.load %arg6[%c0_8, %c0_9, %c0_10, %c0_11] : memref<1x1x32x1xf32, #tpu.memory_space<vmem>>, vector<1x1x32x1xf32>
    tpu.vector_store %arg6[%c0_8, %c0_9, %c0_10, %c0_11], %12 {strides = array<i32>} : memref<1x1x32x1xf32, #tpu.memory_space<vmem>>, vector<1x1x32x1xf32>,
    return
  }
  func.func @transform_0(%arg0: i32, %arg1: i32, %arg2: i32) -> (i32, i32, i32) {
    %c1_i32 = arith.constant 1 : i32
    %0 = arith.muli %arg1, %c1_i32 : i32
    %1 = arith.addi %0, %arg2 : i32
    %c0_i32 = arith.constant 0 : i32
    %c0_i32_0 = arith.constant 0 : i32
    return %arg0, %c0_i32, %1 : i32, i32, i32
  }
  func.func @transform_1(%arg0: i32, %arg1: i32, %arg2: i32) -> (i32, i32) {
    %c0_i32 = arith.constant 0 : i32
    %c0_i32_0 = arith.constant 0 : i32
    %c0_i32_1 = arith.constant 0 : i32
    return %c0_i32, %c0_i32_0 : i32, i32
  }
  func.func @transform_2(%arg0: i32, %arg1: i32, %arg2: i32) -> (i32, i32) {
    %c0_i32 = arith.constant 0 : i32
    %c0_i32_0 = arith.constant 0 : i32
    %c0_i32_1 = arith.constant 0 : i32
    return %c0_i32, %c0_i32_0 : i32, i32
  }
  func.func @transform_3(%arg0: i32, %arg1: i32, %arg2: i32) -> (i32, i32, i32, i32) {
    %c0_i32 = arith.constant 0 : i32
    %c0_i32_0 = arith.constant 0 : i32
    %c0_i32_1 = arith.constant 0 : i32
    return %arg0, %arg1, %c0_i32, %c0_i32_0 : i32, i32, i32, i32
  }
}

</mosaic_0001>

<bundles_post_ra>
// kernel: facial_keypoints_detector.1
= control target key start
LH: loop header
LB: loop body
LE: loop exit
PB: predicated region body
PF: predicated region fallthrough
CT: control target
= control target key end

     0   :  { %s541_s12 = smov 0   ;;  %s543_s13 = smov 0   ;;  %s596_s0 = inlined_call_operand.vmem [shape: f32[2,4,256], index: 0, kind: input, shape index: {}]   ;;  %s597_s1 = inlined_call_operand.vmem [shape: bf16[32,4], index: 1, kind: input, shape index: {}]   ;;  %s598_s2 = inlined_call_operand.vmem [shape: f32[32,1], index: 2, kind: input, shape index: {}]   ;;  %s599_s3 = inlined_call_operand.vmem [shape: f32[2,1,32,1], index: 3, kind: output, shape index: {}]  }
   0x1   :  { %s545_s14 = smov 0  }
   0x2 LB: > { %s32_s15 = sadd.s32 1, %s514_s13  ;;  %p444_p0 = scmp.ge.s32.totalorder %s518_s14, 1  ;;  %s518_s14 = sphi %s545_s14, %s13_s14   ;;  %s514_s13 = sphi %s543_s13, %s601_s13   ;;  %s510_s12 = sphi %s541_s12, %s600_s12  }
   0x3   : > { %p34_p1 = scmp.ge.s32.totalorder %s32_s15, 2  ;;  %p169_p2 = scmp.lt.s32.totalorder %s518_s14, 3 }
   0x5   : > { %s603_s15 = smov (%p34_p1, %s32_s15), 0  ;;  %p170_p3 = pnand %p444_p0, %p169_p2 }
   0x6   : > { %p204_p4 = scmp.lt.s32.totalorder (!%p170_p3), %s510_s12, 1 }
   0x7   : > { %173 = sbr.rel (%p170_p3) target bundleno = 294 (0x126), region = 32 }
   0xc   : > { %v520_v0 = vmov 0   ;;  %v239_v1 = vld [vmem:[%s598_s2 + $0x10] sm:$0xff]  ;;  %v237_v2 = vld [vmem:[%s598_s2] sm:$0xff]  ;;  %s605_s12 = smov (!%p204_p4, %s510_s12), 1  ;;  %v240_v4 = vld [vmem:[%s598_s2 + $0x18] sm:$0xff]  ;;  %vm278_vm0 = vcmask 1041408  }
   0xd   : > { %495 = vset.pattern.permute.xlu1 %v520_v0  ;;  %494 = vset.pattern.permute.xlu0 %v520_v0  ;;  %s463_s20 = sshll.u32 %s605_s12, 3  ;;  %v238_v5 = vld [vmem:[%s598_s2 + $0x8] sm:$0xff]  ;;  %v465_v12 = vld [vmem:[%s597_s1] sm:$0xff]  ;;  %vm271_vm1 = vcmask 31744   ;;  %s464_s5 = sshll.u32 %s605_s12, 5  ;;  %vm343_vm2 = vcmask 7168  }
   0xe   : > { %253 = vperm.xlu1 %495, %v239_v1   ;;  %243 = vperm.xlu0 %494, %v237_v2   ;;  %s211_s23 = scalar_lea.vmem %s596_s0, %s463_s20  ;;  %v466_v13 = vld [vmem:[%s597_s1 + $0x8] sm:$0xff]  ;;  %s222_s8 = scalar_lea.vmem %s599_s3, %s464_s5 }
   0xf   : > { %v224_v3 = vld [vmem:[%s211_s23] sm:$0xff] }
  0x10   : > { %226 = vst [vmem:[#allocation1] ss:$2 sm:$0xff] %v224_v3 }
  0x16   : > { %258 = vperm.xlu1 %495, %v240_v4   ;;  %248 = vperm.xlu0 %494, %v238_v5  }
  0x17   : > { %v227_v6 = vld.sshfl [vmem:[#allocation1] sm:$0xff pattern:$0x75316420]  ;;  %v228_v7 = vld.sshfl [vmem:[#allocation1 + $0x8] sm:$0xff pattern:$0x75316420] }
  0x18   : > { %v231_v8 = vpack.c.bf16 %v227_v6, %v227_v6  ;;  %v232_v9 = vpack.c.bf16 %v228_v7, %v228_v7 }
  0x1a   : > { %v280_v10 = vsel %vm278_vm0, %v231_v8, 0  ;;  %v283_v11 = vsel %vm278_vm0, %v232_v9, 0 }
  0x1b   : > { %292 = vmatpush.bf16.msra.mxu0 %v280_v10  ;;  %467 = vmatpush.bf16.msra.mxu2 %v280_v10 }
  0x1c   : > { %311 = vmatpush.bf16.msra.mxu1 %v283_v11  ;;  %468 = vmatpush.bf16.msra.mxu3 %v283_v11 }
  0x1e   : > { %457 = vmatmul.msk.bf16.vlgmr.msra.gmra.mxu0 %vm271_vm1, %v465_v12  ;;  %458 = vmatmul.msk.bf16.vlgmr.msra.gmra.mxu2 %vm271_vm1, %v466_v13 }
  0x1f   : > { %459 = vmatmul.msk.bf16.vlgmr.msra.gmra.mxu1 %vm271_vm1, %v465_v12  ;;  %460 = vmatmul.msk.bf16.vlgmr.msra.gmra.mxu3 %vm271_vm1, %v466_v13 }
  0x80   : > { %v244_v14 = vpop.permute.xlu0 %243  ;;  %v254_v20 = vpop.permute.xlu1 %253 }
  0x88   : > { %v249_v26 = vpop.permute.xlu0 %248  ;;  %v259_v37 = vpop.permute.xlu1 %258 }
  0x9b   : > { %v294_v15 = vpop.f32.mrf.mxu0 }
  0x9c   : > { %v295_v16 = vadd.f32 %v294_v15, %v244_v14  ;;  %v313_v17 = vpop.f32.mrf.mxu1 }
  0x9d   : > { %v314_v18 = vadd.f32 %v313_v17, %v244_v14 }
  0x9e   : > { %v323_v19 = vmax.f32 %v295_v16, 0.0 }
  0x9f   : > { %v324_v21 = vmax.f32 %v314_v18, 0.0 }
  0xa1   : > { %v299_v22 = vpop.f32.mrf.mxu2  ;;  %v331_v23 = vadd.f32 %v324_v21, %v323_v19 }
  0xa2   : > { %v300_v24 = vadd.f32 %v299_v22, %v254_v20  ;;  %v318_v25 = vpop.f32.mrf.mxu3 }
  0xa3   : > { %v319_v27 = vadd.f32 %v318_v25, %v254_v20  ;;  %332 = vadd.xlane.f32.xlu2 %v331_v23  ;;  %v296_v28 = vpop.f32.mrf.mxu0 }
  0xa4   : > { %v327_v29 = vmax.f32 %v300_v24, 0.0  ;;  %v297_v30 = vadd.f32 %v296_v28, %v249_v26  ;;  %v315_v31 = vpop.f32.mrf.mxu1 }
  0xa5   : > { %v328_v32 = vmax.f32 %v319_v27, 0.0  ;;  %v316_v33 = vadd.f32 %v315_v31, %v249_v26 }
  0xa6   : > { %v325_v34 = vmax.f32 %v297_v30, 0.0 }
  0xa7   : > { %v326_v35 = vmax.f32 %v316_v33, 0.0  ;;  %v337_v36 = vadd.f32 %v328_v32, %v327_v29 }
  0xa9   : > { %338 = vadd.xlane.f32.xlu0 %v337_v36  ;;  %v301_v38 = vpop.f32.mrf.mxu2  ;;  %v334_v39 = vadd.f32 %v326_v35, %v325_v34 }
  0xaa   : > { %v302_v40 = vadd.f32 %v301_v38, %v259_v37  ;;  %v320_v41 = vpop.f32.mrf.mxu3 }
  0xab   : > { %v321_v42 = vadd.f32 %v320_v41, %v259_v37  ;;  %335 = vadd.xlane.f32.xlu2 %v334_v39 }
  0xac   : > { %v329_v43 = vmax.f32 %v302_v40, 0.0 }
  0xad   : > { %v330_v44 = vmax.f32 %v321_v42, 0.0 }
  0xaf   : > { %v340_v45 = vadd.f32 %v330_v44, %v329_v43 }
  0xb1   : > { %341 = vadd.xlane.f32.xlu1 %v340_v45 }
 0x116   : > { %v333_v46 = vpop.xlane.xlu2 %332 }
 0x117   : > { %344 = vst.msk [vmem:[%s222_s8] sm:$0xff] %vm343_vm2, %v333_v46 }
 0x11c   : > { %v339_v47 = vpop.xlane.xlu0 %338 }
 0x11d   : > { %346 = vst.msk [vmem:[%s222_s8 + $0x10] sm:$0xff] %vm343_vm2, %v339_v47 }
 0x11e   : > { %v336_v48 = vpop.xlane.xlu2 %335 }
 0x11f   : > { %345 = vst.msk [vmem:[%s222_s8 + $0x8] sm:$0xff] %vm343_vm2, %v336_v48 }
 0x124   : > { %v342_v49 = vpop.xlane.xlu1 %341 }
 0x125   : > { %347 = vst.msk [vmem:[%s222_s8 + $0x18] sm:$0xff] %vm343_vm2, %v342_v49 }
 0x126 PF: > { %s13_s14 = sadd.s32 1, %s518_s14   ;;  %s600_s12 = smov %s514_s13 }
 0x127   : > { %p10_p5 = scmp.ge.s32.totalorder %s13_s14, 4   ;;  %s601_s13 = smov %s603_s15 }
 0x129   :  { %12 = sbr.rel (!%p10_p5) target bundleno = 2 (0x2), region = 62 }

</bundles_post_ra>
